<compile_context>
chip_gen: v6e
topology: v6e:2x2x1
jax: 0.10.0
libtpu: 0.0.40
codegen_flags: <defaults>
</compile_context>

<pallas_src>
import jax
import jax.numpy as jnp
from jax import lax
from jax.experimental import pallas as pl
from jax.experimental.pallas import tpu as pltpu

F_IN, H1, H2 = 2, 16, 32
SLAB_ROWS = H1 + H2 + 1      # 49 : rows 0:16 -> layer1, 16:48 -> layer2, 48 -> fused fc
SLAB_COLS = H2 + 1           # 33 : cols 0:C  -> W^T,      col C (per section) -> bias


def gnn_kernel(p_ref, a_ref, x_ref, out_ref):
    """p_ref: [49,33] packed params; a_ref: [gb,N,N]; x_ref: [gb,F_IN,N]; out_ref: [gb,1,N]."""
    p = p_ref[...]
    w1t  = p[0:H1, 0:F_IN]                       # [16, 2]
    b1   = p[0:H1, F_IN:F_IN + 1]                # [16, 1]
    w2t  = p[H1:H1 + H2, 0:H1]                   # [32, 16]
    b2   = p[H1:H1 + H2, H1:H1 + 1]              # [32, 1]
    w34t = p[H1 + H2:H1 + H2 + 1, 0:H2]          # [1, 32]  (fused fc1@fc2)
    b34  = p[H1 + H2:H1 + H2 + 1, H2:H2 + 1]     # [1, 1]

    gb = a_ref.shape[0]
    # contract over the last axis of both operands: (H^T @ A^T)[c,m] = sum_n H^T[c,n] * A[m,n]
    dn = (((1,), (1,)), ((), ()))

    for g in range(gb):                          # static unroll over graphs in this block
        a  = a_ref[g]                            # [N, N] normalized adjacency
        xt = x_ref[g]                            # [F_IN, N]  (nodes on lanes)

        # GCN layer 1: relu((A @ (X W1))^T + b1)
        h = jnp.dot(w1t, xt, preferred_element_type=jnp.float32)             # [16, N]
        h = lax.dot_general(h, a, dn, preferred_element_type=jnp.float32)    # [16, N]
        h = jnp.maximum(h + b1, 0.0)

        # GCN layer 2: relu((A @ (H W2))^T + b2)
        h = jnp.dot(w2t, h, preferred_element_type=jnp.float32)              # [32, N]
        h = lax.dot_general(h, a, dn, preferred_element_type=jnp.float32)    # [32, N]
        h = jnp.maximum(h + b2, 0.0)

        # fused fc1+fc2: (H W3 + b3) W4 + b4  ==  H (W3 W4) + (b3 W4 + b4)
        out_ref[g] = jnp.dot(w34t, h, preferred_element_type=jnp.float32) + b34   # [1, N]


def pack_params(params):
    """Fold fc1/fc2 and pack all weights/biases (transposed) into one [49,33] f32 slab."""
    w1, b1, w2, b2, w3, b3, w4, b4 = params
    w34 = w3 @ w4                  # [32, 1]   exact fold (no nonlinearity between fc1/fc2)
    b34 = b3 @ w4 + b4             # [1, 1]
    slab = jnp.zeros((SLAB_ROWS, SLAB_COLS), jnp.float32)
    slab = slab.at[0:H1, 0:F_IN].set(w1.T)
    slab = slab.at[0:H1, F_IN:F_IN + 1].set(b1.reshape(H1, 1))
    slab = slab.at[H1:H1 + H2, 0:H1].set(w2.T)
    slab = slab.at[H1:H1 + H2, H1:H1 + 1].set(b2.reshape(H2, 1))
    slab = slab.at[H1 + H2:, 0:H2].set(w34.T)
    slab = slab.at[H1 + H2:, H2:H2 + 1].set(b34.reshape(1, 1))
    return slab


def build_normalized_adjacency(edge_index, num_nodes):
    """Dense D^-1/2 (A + I) D^-1/2 with A[dst, src] = 1 (PyG GCNConv default norm).
    NOTE: duplicate edges are collapsed and a pre-existing self loop would get weight 2.0,
    a minor deviation from PyG's scatter-add / add_remaining_self_loops for such inputs."""
    src = edge_index[0]
    dst = edge_index[1]
    a = jnp.zeros((num_nodes, num_nodes), jnp.float32)
    a = a.at[dst, src].set(1.0)
    a = a + jnp.eye(num_nodes, dtype=jnp.float32)
    deg = a.sum(axis=1)
    dinv = jnp.where(deg > 0, 1.0 / jnp.sqrt(deg), 0.0)
    return dinv[:, None] * a * dinv[None, :]


def gnn_forward_batched(x_batch, a_batch, params, *, graphs_per_block=None):
    """x_batch: [B, N, 2], a_batch: [B, N, N] -> [B, N, 1]."""
    B, N, f_in = x_batch.shape
    assert f_in == F_IN
    if graphs_per_block is None:
        graphs_per_block = next(g for g in (8, 4, 2, 1) if B % g == 0)
    gb = graphs_per_block
    assert B % gb == 0
    grid = (B // gb,)

    slab = pack_params(params)
    x_t = jnp.transpose(x_batch, (0, 2, 1))          # [B, F_IN, N]  nodes on lanes

    out_t = pl.pallas_call(
        gnn_kernel,
        out_shape=jax.ShapeDtypeStruct((B, 1, N), jnp.float32),
        grid=grid,
        in_specs=[
            pl.BlockSpec((SLAB_ROWS, SLAB_COLS), lambda g: (0, 0)),   # params: one block, reused
            pl.BlockSpec((gb, N, N), lambda g: (g, 0, 0)),            # per-block adjacency
            pl.BlockSpec((gb, F_IN, N), lambda g: (g, 0, 0)),         # per-block features
        ],
        out_specs=pl.BlockSpec((gb, 1, N), lambda g: (g, 0, 0)),
        compiler_params=pltpu.CompilerParams(
            dimension_semantics=("parallel",)),
    )(slab, a_batch, x_t)

    return jnp.transpose(out_t, (0, 2, 1))            # [B, N, 1]


def gnn_forward(x, edge_index, params):
    """Single-graph interface matching the original module: x [N,2], edge_index [2,E] -> [N,1]."""
    a = build_normalized_adjacency(edge_index, x.shape[0])
    return gnn_forward_batched(x[None], a[None], params, graphs_per_block=1)[0]


def init_params(key):
    ks = jax.random.split(key, 8)
    scale = 0.1
    w1 = scale * jax.random.normal(ks[0], (2, 16), jnp.float32)
    b1 = scale * jax.random.normal(ks[1], (1, 16), jnp.float32)
    w2 = scale * jax.random.normal(ks[2], (16, 32), jnp.float32)
    b2 = scale * jax.random.normal(ks[3], (1, 32), jnp.float32)
    w3 = scale * jax.random.normal(ks[4], (32, 16), jnp.float32)
    b3 = scale * jax.random.normal(ks[5], (1, 16), jnp.float32)
    w4 = scale * jax.random.normal(ks[6], (16, 1), jnp.float32)
    b4 = scale * jax.random.normal(ks[7], (1, 1), jnp.float32)
    return (w1, b1, w2, b2, w3, b3, w4, b4)


def gnn_reference(x, edge_index, params):
    """Pure-JAX reference (un-fused, un-transposed) for correctness checking."""
    (w1, b1, w2, b2, w3, b3, w4, b4) = params
    a = build_normalized_adjacency(edge_index, x.shape[0])
    h = jnp.maximum(a @ (x @ w1) + b1, 0.0)
    h = jnp.maximum(a @ (h @ w2) + b2, 0.0)
    h = h @ w3 + b3
    return h @ w4 + b4


if __name__ == "__main__":
    key = jax.random.PRNGKey(0)
    k_x, k_p = jax.random.split(key)

    num_nodes = 8
    batch = 8           # graphs per pallas_call
    gb = 4              # graphs per grid step (grid = (2,), "parallel" -> megacore-shardable)

    # bidirectional ring graph over 8 nodes (E = 16), shared topology, per-graph features
    src = jnp.arange(num_nodes, dtype=jnp.int32)
    dst = (src + 1) % num_nodes
    edge_index = jnp.stack([jnp.concatenate([src, dst]),
                            jnp.concatenate([dst, src])], axis=0)

    x_batch = jax.random.normal(k_x, (batch, num_nodes, 2), jnp.float32)
    a_norm = build_normalized_adjacency(edge_index, num_nodes)
    a_batch = jnp.broadcast_to(a_norm, (batch, num_nodes, num_nodes))

    params = init_params(k_p)

    out = gnn_forward_batched(x_batch, a_batch, params, graphs_per_block=gb)
    out = jax.block_until_ready(out)

    ref = jnp.stack([gnn_reference(x_batch[b], edge_index, params) for b in range(batch)])
    assert out.shape == (batch, num_nodes, 1)
    assert jnp.allclose(out, ref, atol=1e-5, rtol=1e-5), float(jnp.max(jnp.abs(out - ref)))

    # single-graph path matching the original module interface
    out1 = jax.block_until_ready(gnn_forward(x_batch[0], edge_index, params))
    assert out1.shape == (num_nodes, 1)
    assert jnp.allclose(out1, ref[0], atol=1e-5, rtol=1e-5)

    print("KERNEL_OK")
</pallas_src>

<mosaic_0001>
module attributes {stable_mosaic.version = 11 : i64} {
  func.func @gnn_kernel(%arg0: i32, %arg1: memref<49x33xf32, #tpu.memory_space<vmem>>, %arg2: memref<4x8x8xf32, #tpu.memory_space<vmem>>, %arg3: memref<4x2x8xf32, #tpu.memory_space<vmem>>, %arg4: memref<4x1x8xf32, #tpu.memory_space<vmem>>) attributes {dimension_semantics = [#tpu.dimension_semantics<parallel>], iteration_bounds = array<i64: 2>, scalar_prefetch = 0 : i64, scratch_operands = 0 : i64, tpu.core_type = #tpu.core_type<tc>, window_params = [{pipeline_mode = #tpu.pipeline_mode<synchronous>, transform_indices = @transform_0, window_bounds = array<i64: 49, 33>}, {transform_indices = @transform_1, window_bounds = array<i64: 4, 8, 8>}, {transform_indices = @transform_2, window_bounds = array<i64: 4, 2, 8>}, {transform_indices = @transform_3, window_bounds = array<i64: 4, 1, 8>}]} {
    %c0 = arith.constant 0 : index
    %c0_0 = arith.constant 0 : index
    %0 = vector.load %arg1[%c0, %c0_0] : memref<49x33xf32, #tpu.memory_space<vmem>>, vector<49x33xf32>
    %1 = vector.extract_strided_slice %0 {offsets = [0, 0], sizes = [16, 2], strides = [1, 1]} : vector<49x33xf32> to vector<16x2xf32>
    %2 = vector.extract_strided_slice %0 {offsets = [0, 2], sizes = [16, 1], strides = [1, 1]} : vector<49x33xf32> to vector<16x1xf32>
    %3 = vector.extract_strided_slice %0 {offsets = [16, 0], sizes = [32, 16], strides = [1, 1]} : vector<49x33xf32> to vector<32x16xf32>
    %4 = vector.extract_strided_slice %0 {offsets = [16, 16], sizes = [32, 1], strides = [1, 1]} : vector<49x33xf32> to vector<32x1xf32>
    %5 = vector.extract_strided_slice %0 {offsets = [48, 0], sizes = [1, 32], strides = [1, 1]} : vector<49x33xf32> to vector<1x32xf32>
    %6 = vector.extract_strided_slice %0 {offsets = [48, 32], sizes = [1, 1], strides = [1, 1]} : vector<49x33xf32> to vector<1x1xf32>
    %c0_1 = arith.constant 0 : index
    %c0_2 = arith.constant 0 : index
    %c0_3 = arith.constant 0 : index
    %7 = vector.load %arg2[%c0_1, %c0_2, %c0_3] : memref<4x8x8xf32, #tpu.memory_space<vmem>>, vector<1x8x8xf32>
    %8 = vector.shape_cast %7 : vector<1x8x8xf32> to vector<8x8xf32>
    %c0_4 = arith.constant 0 : index
    %c0_5 = arith.constant 0 : index
    %c0_6 = arith.constant 0 : index
    %9 = vector.load %arg3[%c0_4, %c0_5, %c0_6] : memref<4x2x8xf32, #tpu.memory_space<vmem>>, vector<1x2x8xf32>
    %10 = vector.shape_cast %9 : vector<1x2x8xf32> to vector<2x8xf32>
    %cst = arith.constant dense<0.000000e+00> : vector<16x8xf32>
    %11 = tpu.matmul %1, %10, %cst {dimension_numbers = #tpu.dot_dimension_numbers<[1], [0], [0], [1], [0, 0, 1, 1], [], []>} : vector<16x2xf32>, vector<2x8xf32>, vector<16x8xf32> -> vector<16x8xf32>
    %cst_7 = arith.constant dense<0.000000e+00> : vector<16x8xf32>
    %12 = tpu.matmul %11, %8, %cst_7 {dimension_numbers = #tpu.dot_dimension_numbers<[1], [1], [0], [0], [0, 0, 1, 0], [], []>} : vector<16x8xf32>, vector<8x8xf32>, vector<16x8xf32> -> vector<16x8xf32>
    %13 = vector.broadcast %2 : vector<16x1xf32> to vector<16x8xf32>
    %14 = arith.addf %12, %13 : vector<16x8xf32>
    %cst_8 = arith.constant 0.000000e+00 : f32
    %15 = vector.broadcast %cst_8 : f32 to vector<16x8xf32>
    %16 = arith.maximumf %14, %15 : vector<16x8xf32>
    %cst_9 = arith.constant dense<0.000000e+00> : vector<32x8xf32>
    %17 = tpu.matmul %3, %16, %cst_9 {dimension_numbers = #tpu.dot_dimension_numbers<[1], [0], [0], [1], [0, 0, 1, 1], [], []>} : vector<32x16xf32>, vector<16x8xf32>, vector<32x8xf32> -> vector<32x8xf32>
    %cst_10 = arith.constant dense<0.000000e+00> : vector<32x8xf32>
    %18 = tpu.matmul %17, %8, %cst_10 {dimension_numbers = #tpu.dot_dimension_numbers<[1], [1], [0], [0], [0, 0, 1, 0], [], []>} : vector<32x8xf32>, vector<8x8xf32>, vector<32x8xf32> -> vector<32x8xf32>
    %19 = vector.broadcast %4 : vector<32x1xf32> to vector<32x8xf32>
    %20 = arith.addf %18, %19 : vector<32x8xf32>
    %cst_11 = arith.constant 0.000000e+00 : f32
    %21 = vector.broadcast %cst_11 : f32 to vector<32x8xf32>
    %22 = arith.maximumf %20, %21 : vector<32x8xf32>
    %cst_12 = arith.constant dense<0.000000e+00> : vector<1x8xf32>
    %23 = tpu.matmul %5, %22, %cst_12 {dimension_numbers = #tpu.dot_dimension_numbers<[1], [0], [0], [1], [0, 0, 1, 1], [], []>} : vector<1x32xf32>, vector<32x8xf32>, vector<1x8xf32> -> vector<1x8xf32>
    %24 = vector.broadcast %6 : vector<1x1xf32> to vector<1x8xf32>
    %25 = arith.addf %23, %24 : vector<1x8xf32>
    %c0_13 = arith.constant 0 : index
    %c0_14 = arith.constant 0 : index
    %c0_15 = arith.constant 0 : index
    %26 = vector.load %arg4[%c0_13, %c0_14, %c0_15] : memref<4x1x8xf32, #tpu.memory_space<vmem>>, vector<1x1x8xf32>
    %27 = vector.shape_cast %26 : vector<1x1x8xf32> to vector<1x8xf32>
    %28 = vector.shape_cast %25 : vector<1x8xf32> to vector<1x1x8xf32>
    tpu.vector_store %arg4[%c0_13, %c0_14, %c0_15], %28 {strides = array<i32>} : memref<4x1x8xf32, #tpu.memory_space<vmem>>, vector<1x1x8xf32>,
    %c1 = arith.constant 1 : index
    %c0_16 = arith.constant 0 : index
    %c0_17 = arith.constant 0 : index
    %29 = vector.load %arg2[%c1, %c0_16, %c0_17] : memref<4x8x8xf32, #tpu.memory_space<vmem>>, vector<1x8x8xf32>
    %30 = vector.shape_cast %29 : vector<1x8x8xf32> to vector<8x8xf32>
    %c1_18 = arith.constant 1 : index
    %c0_19 = arith.constant 0 : index
    %c0_20 = arith.constant 0 : index
    %31 = vector.load %arg3[%c1_18, %c0_19, %c0_20] : memref<4x2x8xf32, #tpu.memory_space<vmem>>, vector<1x2x8xf32>
    %32 = vector.shape_cast %31 : vector<1x2x8xf32> to vector<2x8xf32>
    %cst_21 = arith.constant dense<0.000000e+00> : vector<16x8xf32>
    %33 = tpu.matmul %1, %32, %cst_21 {dimension_numbers = #tpu.dot_dimension_numbers<[1], [0], [0], [1], [0, 0, 1, 1], [], []>} : vector<16x2xf32>, vector<2x8xf32>, vector<16x8xf32> -> vector<16x8xf32>
    %cst_22 = arith.constant dense<0.000000e+00> : vector<16x8xf32>
    %34 = tpu.matmul %33, %30, %cst_22 {dimension_numbers = #tpu.dot_dimension_numbers<[1], [1], [0], [0], [0, 0, 1, 0], [], []>} : vector<16x8xf32>, vector<8x8xf32>, vector<16x8xf32> -> vector<16x8xf32>
    %35 = vector.broadcast %2 : vector<16x1xf32> to vector<16x8xf32>
    %36 = arith.addf %34, %35 : vector<16x8xf32>
    %cst_23 = arith.constant 0.000000e+00 : f32
    %37 = vector.broadcast %cst_23 : f32 to vector<16x8xf32>
    %38 = arith.maximumf %36, %37 : vector<16x8xf32>
    %cst_24 = arith.constant dense<0.000000e+00> : vector<32x8xf32>
    %39 = tpu.matmul %3, %38, %cst_24 {dimension_numbers = #tpu.dot_dimension_numbers<[1], [0], [0], [1], [0, 0, 1, 1], [], []>} : vector<32x16xf32>, vector<16x8xf32>, vector<32x8xf32> -> vector<32x8xf32>
    %cst_25 = arith.constant dense<0.000000e+00> : vector<32x8xf32>
    %40 = tpu.matmul %39, %30, %cst_25 {dimension_numbers = #tpu.dot_dimension_numbers<[1], [1], [0], [0], [0, 0, 1, 0], [], []>} : vector<32x8xf32>, vector<8x8xf32>, vector<32x8xf32> -> vector<32x8xf32>
    %41 = vector.broadcast %4 : vector<32x1xf32> to vector<32x8xf32>
    %42 = arith.addf %40, %41 : vector<32x8xf32>
    %cst_26 = arith.constant 0.000000e+00 : f32
    %43 = vector.broadcast %cst_26 : f32 to vector<32x8xf32>
    %44 = arith.maximumf %42, %43 : vector<32x8xf32>
    %cst_27 = arith.constant dense<0.000000e+00> : vector<1x8xf32>
    %45 = tpu.matmul %5, %44, %cst_27 {dimension_numbers = #tpu.dot_dimension_numbers<[1], [0], [0], [1], [0, 0, 1, 1], [], []>} : vector<1x32xf32>, vector<32x8xf32>, vector<1x8xf32> -> vector<1x8xf32>
    %46 = vector.broadcast %6 : vector<1x1xf32> to vector<1x8xf32>
    %47 = arith.addf %45, %46 : vector<1x8xf32>
    %c1_28 = arith.constant 1 : index
    %c0_29 = arith.constant 0 : index
    %c0_30 = arith.constant 0 : index
    %48 = vector.load %arg4[%c1_28, %c0_29, %c0_30] : memref<4x1x8xf32, #tpu.memory_space<vmem>>, vector<1x1x8xf32>
    %49 = vector.shape_cast %48 : vector<1x1x8xf32> to vector<1x8xf32>
    %50 = vector.shape_cast %47 : vector<1x8xf32> to vector<1x1x8xf32>
    tpu.vector_store %arg4[%c1_28, %c0_29, %c0_30], %50 {strides = array<i32>} : memref<4x1x8xf32, #tpu.memory_space<vmem>>, vector<1x1x8xf32>,
    %c2 = arith.constant 2 : index
    %c0_31 = arith.constant 0 : index
    %c0_32 = arith.constant 0 : index
    %51 = vector.load %arg2[%c2, %c0_31, %c0_32] : memref<4x8x8xf32, #tpu.memory_space<vmem>>, vector<1x8x8xf32>
    %52 = vector.shape_cast %51 : vector<1x8x8xf32> to vector<8x8xf32>
    %c2_33 = arith.constant 2 : index
    %c0_34 = arith.constant 0 : index
    %c0_35 = arith.constant 0 : index
    %53 = vector.load %arg3[%c2_33, %c0_34, %c0_35] : memref<4x2x8xf32, #tpu.memory_space<vmem>>, vector<1x2x8xf32>
    %54 = vector.shape_cast %53 : vector<1x2x8xf32> to vector<2x8xf32>
    %cst_36 = arith.constant dense<0.000000e+00> : vector<16x8xf32>
    %55 = tpu.matmul %1, %54, %cst_36 {dimension_numbers = #tpu.dot_dimension_numbers<[1], [0], [0], [1], [0, 0, 1, 1], [], []>} : vector<16x2xf32>, vector<2x8xf32>, vector<16x8xf32> -> vector<16x8xf32>
    %cst_37 = arith.constant dense<0.000000e+00> : vector<16x8xf32>
    %56 = tpu.matmul %55, %52, %cst_37 {dimension_numbers = #tpu.dot_dimension_numbers<[1], [1], [0], [0], [0, 0, 1, 0], [], []>} : vector<16x8xf32>, vector<8x8xf32>, vector<16x8xf32> -> vector<16x8xf32>
    %57 = vector.broadcast %2 : vector<16x1xf32> to vector<16x8xf32>
    %58 = arith.addf %56, %57 : vector<16x8xf32>
    %cst_38 = arith.constant 0.000000e+00 : f32
    %59 = vector.broadcast %cst_38 : f32 to vector<16x8xf32>
    %60 = arith.maximumf %58, %59 : vector<16x8xf32>
    %cst_39 = arith.constant dense<0.000000e+00> : vector<32x8xf32>
    %61 = tpu.matmul %3, %60, %cst_39 {dimension_numbers = #tpu.dot_dimension_numbers<[1], [0], [0], [1], [0, 0, 1, 1], [], []>} : vector<32x16xf32>, vector<16x8xf32>, vector<32x8xf32> -> vector<32x8xf32>
    %cst_40 = arith.constant dense<0.000000e+00> : vector<32x8xf32>
    %62 = tpu.matmul %61, %52, %cst_40 {dimension_numbers = #tpu.dot_dimension_numbers<[1], [1], [0], [0], [0, 0, 1, 0], [], []>} : vector<32x8xf32>, vector<8x8xf32>, vector<32x8xf32> -> vector<32x8xf32>
    %63 = vector.broadcast %4 : vector<32x1xf32> to vector<32x8xf32>
    %64 = arith.addf %62, %63 : vector<32x8xf32>
    %cst_41 = arith.constant 0.000000e+00 : f32
    %65 = vector.broadcast %cst_41 : f32 to vector<32x8xf32>
    %66 = arith.maximumf %64, %65 : vector<32x8xf32>
    %cst_42 = arith.constant dense<0.000000e+00> : vector<1x8xf32>
    %67 = tpu.matmul %5, %66, %cst_42 {dimension_numbers = #tpu.dot_dimension_numbers<[1], [0], [0], [1], [0, 0, 1, 1], [], []>} : vector<1x32xf32>, vector<32x8xf32>, vector<1x8xf32> -> vector<1x8xf32>
    %68 = vector.broadcast %6 : vector<1x1xf32> to vector<1x8xf32>
    %69 = arith.addf %67, %68 : vector<1x8xf32>
    %c2_43 = arith.constant 2 : index
    %c0_44 = arith.constant 0 : index
    %c0_45 = arith.constant 0 : index
    %70 = vector.load %arg4[%c2_43, %c0_44, %c0_45] : memref<4x1x8xf32, #tpu.memory_space<vmem>>, vector<1x1x8xf32>
    %71 = vector.shape_cast %70 : vector<1x1x8xf32> to vector<1x8xf32>
    %72 = vector.shape_cast %69 : vector<1x8xf32> to vector<1x1x8xf32>
    tpu.vector_store %arg4[%c2_43, %c0_44, %c0_45], %72 {strides = array<i32>} : memref<4x1x8xf32, #tpu.memory_space<vmem>>, vector<1x1x8xf32>,
    %c3 = arith.constant 3 : index
    %c0_46 = arith.constant 0 : index
    %c0_47 = arith.constant 0 : index
    %73 = vector.load %arg2[%c3, %c0_46, %c0_47] : memref<4x8x8xf32, #tpu.memory_space<vmem>>, vector<1x8x8xf32>
    %74 = vector.shape_cast %73 : vector<1x8x8xf32> to vector<8x8xf32>
    %c3_48 = arith.constant 3 : index
    %c0_49 = arith.constant 0 : index
    %c0_50 = arith.constant 0 : index
    %75 = vector.load %arg3[%c3_48, %c0_49, %c0_50] : memref<4x2x8xf32, #tpu.memory_space<vmem>>, vector<1x2x8xf32>
    %76 = vector.shape_cast %75 : vector<1x2x8xf32> to vector<2x8xf32>
    %cst_51 = arith.constant dense<0.000000e+00> : vector<16x8xf32>
    %77 = tpu.matmul %1, %76, %cst_51 {dimension_numbers = #tpu.dot_dimension_numbers<[1], [0], [0], [1], [0, 0, 1, 1], [], []>} : vector<16x2xf32>, vector<2x8xf32>, vector<16x8xf32> -> vector<16x8xf32>
    %cst_52 = arith.constant dense<0.000000e+00> : vector<16x8xf32>
    %78 = tpu.matmul %77, %74, %cst_52 {dimension_numbers = #tpu.dot_dimension_numbers<[1], [1], [0], [0], [0, 0, 1, 0], [], []>} : vector<16x8xf32>, vector<8x8xf32>, vector<16x8xf32> -> vector<16x8xf32>
    %79 = vector.broadcast %2 : vector<16x1xf32> to vector<16x8xf32>
    %80 = arith.addf %78, %79 : vector<16x8xf32>
    %cst_53 = arith.constant 0.000000e+00 : f32
    %81 = vector.broadcast %cst_53 : f32 to vector<16x8xf32>
    %82 = arith.maximumf %80, %81 : vector<16x8xf32>
    %cst_54 = arith.constant dense<0.000000e+00> : vector<32x8xf32>
    %83 = tpu.matmul %3, %82, %cst_54 {dimension_numbers = #tpu.dot_dimension_numbers<[1], [0], [0], [1], [0, 0, 1, 1], [], []>} : vector<32x16xf32>, vector<16x8xf32>, vector<32x8xf32> -> vector<32x8xf32>
    %cst_55 = arith.constant dense<0.000000e+00> : vector<32x8xf32>
    %84 = tpu.matmul %83, %74, %cst_55 {dimension_numbers = #tpu.dot_dimension_numbers<[1], [1], [0], [0], [0, 0, 1, 0], [], []>} : vector<32x8xf32>, vector<8x8xf32>, vector<32x8xf32> -> vector<32x8xf32>
    %85 = vector.broadcast %4 : vector<32x1xf32> to vector<32x8xf32>
    %86 = arith.addf %84, %85 : vector<32x8xf32>
    %cst_56 = arith.constant 0.000000e+00 : f32
    %87 = vector.broadcast %cst_56 : f32 to vector<32x8xf32>
    %88 = arith.maximumf %86, %87 : vector<32x8xf32>
    %cst_57 = arith.constant dense<0.000000e+00> : vector<1x8xf32>
    %89 = tpu.matmul %5, %88, %cst_57 {dimension_numbers = #tpu.dot_dimension_numbers<[1], [0], [0], [1], [0, 0, 1, 1], [], []>} : vector<1x32xf32>, vector<32x8xf32>, vector<1x8xf32> -> vector<1x8xf32>
    %90 = vector.broadcast %6 : vector<1x1xf32> to vector<1x8xf32>
    %91 = arith.addf %89, %90 : vector<1x8xf32>
    %c3_58 = arith.constant 3 : index
    %c0_59 = arith.constant 0 : index
    %c0_60 = arith.constant 0 : index
    %92 = vector.load %arg4[%c3_58, %c0_59, %c0_60] : memref<4x1x8xf32, #tpu.memory_space<vmem>>, vector<1x1x8xf32>
    %93 = vector.shape_cast %92 : vector<1x1x8xf32> to vector<1x8xf32>
    %94 = vector.shape_cast %91 : vector<1x8xf32> to vector<1x1x8xf32>
    tpu.vector_store %arg4[%c3_58, %c0_59, %c0_60], %94 {strides = array<i32>} : memref<4x1x8xf32, #tpu.memory_space<vmem>>, vector<1x1x8xf32>,
    return
  }
  func.func @transform_0(%arg0: i32) -> (i32, i32) {
    %c0_i32 = arith.constant 0 : i32
    %c0_i32_0 = arith.constant 0 : i32
    %c0_i32_1 = arith.constant 0 : i32
    return %c0_i32, %c0_i32_0 : i32, i32
  }
  func.func @transform_1(%arg0: i32) -> (i32, i32, i32) {
    %c0_i32 = arith.constant 0 : i32
    %c0_i32_0 = arith.constant 0 : i32
    %c0_i32_1 = arith.constant 0 : i32
    return %arg0, %c0_i32, %c0_i32_0 : i32, i32, i32
  }
  func.func @transform_2(%arg0: i32) -> (i32, i32, i32) {
    %c0_i32 = arith.constant 0 : i32
    %c0_i32_0 = arith.constant 0 : i32
    %c0_i32_1 = arith.constant 0 : i32
    return %arg0, %c0_i32, %c0_i32_0 : i32, i32, i32
  }
  func.func @transform_3(%arg0: i32) -> (i32, i32, i32) {
    %c0_i32 = arith.constant 0 : i32
    %c0_i32_0 = arith.constant 0 : i32
    %c0_i32_1 = arith.constant 0 : i32
    return %arg0, %c0_i32, %c0_i32_0 : i32, i32, i32
  }
}

</mosaic_0001>

<bundles_post_ra>
// kernel: tpu_custom_call.1
= control target key start
LH: loop header
LB: loop body
LE: loop exit
PB: predicated region body
PF: predicated region fallthrough
CT: control target
= control target key end

     0   :  { %8 = vsyncpa [#allocation3], 0  ;;  %s2861_s0 = inlined_call_operand.vmem [shape: f32[49,33], index: 0, kind: input, shape index: {}]   ;;  %s2862_s1 = inlined_call_operand.vmem [shape: f32[8,8,8], index: 1, kind: input, shape index: {}]   ;;  %s2863_s2 = inlined_call_operand.vmem [shape: f32[8,2,8], index: 2, kind: input, shape index: {}]   ;;  %s2864_s3 = inlined_call_operand.hbm [shape: f32[8,1,8], index: 3, kind: output, shape index: {}]  }
   0x1   :  { %10 = vsyncpa [#allocation3 + $0x1], 0  ;;  %s2518_s12 = smov 0   ;;  %s2520_s13 = smov 0  }
   0x2   :  { %s2522_s14 = smov 0   ;;  %s2524_s15 = smov 0  }
   0x3 LB: > { %s2539_s16 = sadd.s32 4294967295, %s2488_s15   ;;  %s2045_s17 = sadd.s32 4294967294, %s2488_s15   ;;  %s2488_s15 = sphi %s2524_s15, %s2870_s15   ;;  %s2484_s14 = sphi %s2522_s14, %s2869_s14   ;;  %s2480_s13 = sphi %s2520_s13, %s2868_s13   ;;  %s2476_s12 = sphi %s2518_s12, %s2867_s12  }
   0x4   : > { %s2543_s18 = sadd.s32 1, %s2488_s15   ;;  %s96_s19 = sadd.s32 1, %s2484_s14 }
   0x5   : > { %s93_s20 = ssub.s32 %s2488_s15, %s2543_s18  ;;  %p106_p0 = scmp.ne.s32.totalorder %s2484_s14, %s2480_s13 }
   0x6   : > { %p94_p1 = scmp.eq.s32.totalorder %s93_s20, 0  ;;  %p107_p2 = scmp.eq.s32.totalorder %s2539_s16, 1 }
   0x7   : > { %p112_p3 = scmp.ne.s32.totalorder %s2480_s13, %s2476_s12  ;;  %p113_p4 = scmp.eq.s32.totalorder %s2045_s17, 1 }
   0x8   : > { %s2554_s21 = scalar_select %p94_p1, %s2484_s14, %s96_s19  }
   0x9   : > { %p2556_p5 = por %p107_p2, %p106_p0  ;;  %p2560_p6 = por %p113_p4, %p112_p3 }
   0xa   : > { %p2048_p7 = scmp.ge.s32.totalorder %s2488_s15, 1  ;;  %p152_p8 = scmp.lt.s32.totalorder %s2488_s15, 3 }
   0xc   : > { %p153_p9 = pnand %p2048_p7, %p152_p8 }
   0xd   : > { %s2050_s24 = sshll.u32 (!%p153_p9), %s2539_s16, 2  ;;  %s178_s29 = sand.u32 (!%p153_p9), 1, %s2480_s13  }
   0xe   : > { %156 = sbr.rel (%p153_p9) target bundleno = 2862 (0xb2e), region = 32  ;;  %p182_p10 = scmp.lt.s32.totalorder (!%p153_p9), %s2050_s24, 7 }
   0xf   : > { %s2049_s4 = sshll.u32 (!%p153_p9), %s178_s29, 2  ;;  %s2821_s10 = scalar_lea.sflag (!%p153_p9), [#allocation3], %s178_s29 }
  0x10   : > { %s2693_s5 = scalar_lea.vmem (!%p153_p9), [#allocation2], %s2049_s4  ;;  %s2495_s11 = smov (!%p153_p9), [#allocation2]  }
  0x11   : > { %s2432_s17 = sshll.u32 (!%p153_p9), %s2495_s11, 4  ;;  %s2433_s17 = int_to_ptr.vmem [resolvable:$false] %s2432_s17 }
  0x12   : > { %s2434_s19 = scalar_lea.vmem (!%p153_p9), %s2433_s17, 128 }
  0x13   : > { %v2570_v0 = vld [vmem:[%s2861_s0] sm:$0xff]  ;;  %vm203_vm0 = vcmask 15360   ;;  %s2872_s24 = smov (!%p182_p10, %s2050_s24), 7  ;;  %vm210_vm1 = vcmask 1041408   ;;  %v2583_v2 = vld [vmem:[%s2861_s0 + $0x8] sm:$0xff]  ;;  %vm297_vm2 = vcmask 64512  }
  0x14   : > { %2223 = vmatprep.mubr.msk.f32.mxu0 %vm203_vm0, %v2570_v0  ;;  %s2053_s27 = sshll.u32 %s2872_s24, 1  ;;  %s2051_s6 = sshll.u32 %s2872_s24, 3  ;;  %v2490_v4 = vmov 2   ;;  %v2606_v7 = vld [vmem:[%s2861_s0 + $0x10] sm:$0xff]  ;;  %vm384_vm3 = vcmask 130048   ;;  %v2619_v16 = vld [vmem:[%s2861_s0 + $0x18] sm:$0xff] }
  0x15   : > { %s2577_s30 = scalar_lea.vmem %s2863_s2, %s2053_s27  ;;  %s2592_s9 = scalar_lea.vmem %s2862_s1, %s2051_s6  ;;  %2423 = vset.pattern.permute.xlu0 %v2490_v4  ;;  %v2624_v17 = vld [vmem:[%s2861_s0 + $0x20] sm:$0xff]  ;;  %v2633_v18 = vld [vmem:[%s2861_s0 + $0x28] sm:$0xff]  ;;  %v2491_v20 = vmov 16   ;;  %v2492_v25 = vmov 0.0   ;;  %vm2493_vm4 = vmmov 0   ;;  %v2494_v27 = vmov 32  }
  0x16   : > { %v202_v1 = vld [vmem:[%s2577_s30] sm:$0x3]  ;;  %294 = vperm.xlu0 %2423, %v2583_v2   ;;  %v2071_v19 = vld [vmem:[%s2577_s30 + $0x2] sm:$0x3]  ;;  %2424 = vset.pattern.permute.xlu1 %v2491_v20  ;;  %v2660_v26 = vld [vmem:[%s2861_s0 + $0x30] sm:$0x1] }
  0x17   : > { %2221 = vmatprep.subr.msk.mxu0 %vm210_vm1, %v202_v1  ;;  %v201_v3 = vld [vmem:[%s2592_s9] sm:$0xff]  ;;  %495 = vperm.xlu1 %2424, %v2633_v18   ;;  %vm604_vm5 = vcmask 261120   ;;  %v2070_v45 = vld [vmem:[%s2592_s9 + $0x8] sm:$0xff]  ;;  %vm677_vm6 = vcmask 57344   ;;  %s2132_s6 = sshll.u32 %s2539_s16, 6 }
  0x18   : > { %2222 = vmatpush3.msk.msra.mxu0 %vm210_vm1, %v202_v1  ;;  %2226 = vmatprep.subr.msk.mxu1 %vm297_vm2, %v201_v3  ;;  %v2090_v57 = vld [vmem:[%s2577_s30 + $0x4] sm:$0x3] }
  0x19   : > { %2224 = vmatmul.mubr.msk.f32.vlgmr.msra.gmra.mxu0 %vm203_vm0, %v2583_v2  ;;  %2227 = vmatpush3.xpose.msk.msra.mxu1 %vm297_vm2, %v201_v3 }
  0x1a   : > { %2241 = vmatprep.subr.msk.mxu1 %vm297_vm2, %v201_v3  ;;  %290 = vperm.xlu0 %2423, %v2570_v0  }
  0x1b   : > { %2235 = vmatprep.mubr.msk.f32.mxu0 %vm384_vm3, %v2606_v7  ;;  %491 = vperm.xlu1 %2424, %v2624_v17  }
  0x1e   : > { %2425 = vset.pattern.permute.xlu0 %v2491_v20 }
  0x1f   : > { %487 = vperm.xlu0 %2425, %v2619_v16   ;;  %483 = vperm.xlu1 %2424, %v2606_v7  }
  0x23   : > { %2426 = vset.pattern.permute.xlu1 %v2494_v27  ;;  %2427 = vset.pattern.permute.xlu0 %v2494_v27 }
  0x24   : > { %601 = vperm.xlu1 %2426, %v2660_v26  }
  0x91   : > { %v2610_v8 = vpop.permute.xlu0 %294 }
  0x92   : > { %v2663_v28 = vpop.permute.xlu1 %495 }
  0x95   : > { %v2613_v11 = vpop.permute.xlu0 %290 }
  0x96   : > { %v2665_v29 = vpop.permute.xlu1 %491 }
  0x9a   : > { %v2667_v32 = vpop.permute.xlu0 %487  ;;  %v2670_v35 = vpop.permute.xlu1 %483 }
  0x9f   : > { %v2690_v47 = vpop.permute.xlu1 %601 }
  0xd9   : > { %v2225_v5 = vpop.f32.mrf.mxu0 }
  0xdb   : > { %v280_v6 = vpop.f32.mrf.mxu0 }
  0xdc   : > { %2228 = vmatprep.mubr.msk.f32.mxu1 %vm297_vm2, %v280_v6 }
  0xdd   : > { %2229 = vmatmul.mubr.msk.f32.vlgmr.msra.gmra.mxu1 %vm297_vm2, %v2225_v5 }
  0xde   : > { %2242 = vmatpush3.xpose.msk.msra.mxu1 %vm297_vm2, %v201_v3 }
  0xdf   : > { %2260 = vmatprep.subr.msk.mxu1 %vm210_vm1, %v2071_v19 }
 0x19d   : > { %v2230_v9 = vpop.f32.mrf.mxu1 }
 0x19e   : > { %v379_v10 = vadd.f32 %v2230_v9, %v2610_v8 }
 0x19f   : > { %v373_v12 = vpop.f32.mrf.mxu1 }
 0x1a0   : > { %v383_v13 = vmax.f32 %v379_v10, 0.0  ;;  %v374_v14 = vadd.f32 %v373_v12, %v2613_v11 }
 0x1a2   : > { %v382_v15 = vmax.f32 %v374_v14, 0.0  ;;  %2231 = vmatprep.subr.mxu0 %v383_v13 }
 0x1a3   : > { %2232 = vmatpush3.msra.mxu0 %v383_v13 }
 0x1a4   : > { %2233 = vmatprep.subr.mxu0 %v382_v15 }
 0x1a5   : > { %2234 = vmatpush3.msra.mxu0 %v382_v15 }
 0x1a6   : > { %2236 = vmatmul.mubr.msk.f32.vlgmr.msra.gmra.mxu0 %vm384_vm3, %v2619_v16  ;;  %2249 = vmatprep.subr.mxu0 %v2492_v25 }
 0x1a7   : > { %2238 = vmatprep.mubr.msk.f32.mxu0 %vm384_vm3, %v2624_v17 }
 0x1aa   : > { %2239 = vmatmul.mubr.msk.f32.gmra.mxu0 %vm384_vm3, %v2633_v18 }
 0x1ab   : > { %2257 = vmatprep.mubr.msk.f32.mxu0 %vm2493_vm4, %v2492_v25 }
 0x266   : > { %v2237_v21 = vpop.f32.mrf.mxu0 }
 0x268   : > { %v463_v22 = vpop.f32.mrf.mxu0 }
 0x269   : > { %2243 = vmatprep.mubr.msk.f32.mxu1 %vm297_vm2, %v463_v22 }
 0x26a   : > { %v2240_v23 = vpop.f32.mrf.mxu0  ;;  %2244 = vmatmul.mubr.msk.f32.vlgmr.msra.gmra.mxu1 %vm297_vm2, %v2237_v21 }
 0x26b   : > { %2261 = vmatpush3.msk.msra.mxu1 %vm210_vm1, %v2071_v19  ;;  %v2089_v19 = vld [vmem:[%s2592_s9 + $0x10] sm:$0xff] }
 0x26c   : > { %v473_v24 = vpop.f32.mrf.mxu0 }
 0x26d   : > { %2246 = vmatprep.mubr.msk.f32.mxu1 %vm297_vm2, %v473_v24 }
 0x26e   : > { %2247 = vmatmul.mubr.msk.f32.gmra.mxu1 %vm297_vm2, %v2240_v23 }
 0x26f   : > { %2262 = vmatprep.mubr.msk.f32.mxu1 %vm203_vm0, %v2570_v0 }
 0x272   : > { %2263 = vmatmul.mubr.msk.f32.vlgmr.msra.gmra.mxu1 %vm203_vm0, %v2583_v2 }
 0x273   : > { %2274 = vmatprep.mubr.msk.f32.mxu1 %vm384_vm3, %v2606_v7 }
 0x32a   : > { %v2245_v30 = vpop.f32.mrf.mxu1 }
 0x32b   : > { %v582_v37 = vadd.f32 %v2245_v30, %v2667_v32 }
 0x32c   : > { %v576_v31 = vpop.f32.mrf.mxu1 }
 0x32d   : > { %v577_v40 = vadd.f32 %v576_v31, %v2670_v35  ;;  %v596_v43 = vmax.f32 %v582_v37, 0.0 }
 0x32e   : > { %v2248_v33 = vpop.f32.mrf.mxu1 }
 0x32f   : > { %v592_v34 = vadd.f32 %v2248_v33, %v2663_v28  ;;  %v595_v44 = vmax.f32 %v577_v40, 0.0 }
 0x330   : > { %v586_v36 = vpop.f32.mrf.mxu1 }
 0x331   : > { %v598_v38 = vmax.f32 %v592_v34, 0.0  ;;  %v587_v39 = vadd.f32 %v586_v36, %v2665_v29  ;;  %v2109_v36 = vld [vmem:[%s2577_s30 + $0x6] sm:$0x3]  ;;  %s1971_s30 = sshll.u32 %s2693_s5, 4  ;;  %s2809_s30 = int_to_ptr.vmem [resolvable:$true] %s1971_s30 }
 0x332   : > { %v2264_v42 = vpop.f32.mrf.mxu1  ;;  %s2428_s16 = scalar_lea.vmem %s2809_s30, 64  ;;  %p2435_p0 = scmp.lt.s32.totalorder %s2809_s30, %s2433_s17 }
 0x333   : > { %v597_v41 = vmax.f32 %v587_v39, 0.0  ;;  %2250 = vmatpush3.msra.mxu0 %v598_v38  ;;  %p2429_p11 = scmp.ne.s32.totalorder %s2809_s30, %s2428_s16  ;;  %p2436_p1 = scmp.lt.s32.totalorder %s2434_s19, %s2428_s16 }
 0x334   : > { %2251 = vmatprep.subr.mxu0 %v2492_v25  ;;  %v752_v46 = vpop.f32.mrf.mxu1 }
 0x335   : > { %2252 = vmatpush3.msra.mxu0 %v597_v41  ;;  %p2430_p12 = pnand %p2429_p11, %p2556_p5  ;;  %p2437_p2 = por %p2436_p1, %p2435_p0 }
 0x336   : > { %2253 = vmatprep.subr.mxu0 %v2492_v25 }
 0x337   : > { %2254 = vmatpush3.msra.mxu0 %v596_v43  ;;  %p2431_p13 = pneg %p2430_p12 }
 0x338   : > { %2255 = vmatprep.subr.mxu0 %v2492_v25 }
 0x339   : > { %2256 = vmatpush3.msra.mxu0 %v595_v44  ;;  %p2438_p3 = pnand %p2437_p2, %p2431_p13 }
 0x33a   : > { %2258 = vmatmul.mubr.msk.f32.vlgmr.msra.gmra.mxu0 %vm604_vm5, %v2660_v26  ;;  %2265 = vmatprep.subr.msk.mxu0 %vm297_vm2, %v2070_v45 }
 0x33b   : > { %2266 = vmatpush3.xpose.msk.msra.mxu0 %vm297_vm2, %v2070_v45  ;;  %2267 = vmatprep.mubr.msk.f32.mxu0 %vm297_vm2, %v752_v46 }
 0x33c   : > { %2280 = vmatprep.subr.msk.mxu0 %vm297_vm2, %v2070_v45 }
 0x33e   : > { %2268 = vmatmul.mubr.msk.f32.vlgmr.msra.gmra.mxu0 %vm297_vm2, %v2264_v42 }
 0x33f   : > { %2281 = vmatpush3.xpose.msk.msra.mxu0 %vm297_vm2, %v2070_v45 }
 0x340   : > { %2299 = vmatprep.subr.msk.mxu0 %vm210_vm1, %v2090_v57 }
 0x3fa   : > { %v673_v48 = vpop.f32.mrf.mxu0 }
 0x3fb   : > { %v674_v49 = vadd.f32 %v673_v48, %v2690_v47 }
 0x3fc   : > { %v2259_v50 = vpop.f32.mrf.mxu0 }
 0x3fd   : > { %678 = vst.msk [vmem:[%s2693_s5] sm:$0x1] %vm677_vm6, %v674_v49 }
 0x3fe   : > { %v2269_v51 = vpop.f32.mrf.mxu0 }
 0x3ff   : > { %v842_v52 = vadd.f32 %v2269_v51, %v2610_v8 }
 0x400   : > { %v836_v53 = vpop.f32.mrf.mxu0 }
 0x401   : > { %v846_v54 = vmax.f32 %v842_v52, 0.0  ;;  %v837_v55 = vadd.f32 %v836_v53, %v2613_v11  ;;  %v2108_v52 = vld [vmem:[%s2592_s9 + $0x18] sm:$0xff]  ;;  %s2814_s9 = scalar_lea.hbm %s2864_s3, %s2132_s6 }
 0x403   : > { %v845_v56 = vmax.f32 %v837_v55, 0.0  ;;  %2270 = vmatprep.subr.mxu1 %v846_v54 }
 0x404   : > { %2271 = vmatpush3.msra.mxu1 %v846_v54 }
 0x405   : > { %2272 = vmatprep.subr.mxu1 %v845_v56 }
 0x406   : > { %2273 = vmatpush3.msra.mxu1 %v845_v56 }
 0x407   : > { %2275 = vmatmul.mubr.msk.f32.vlgmr.msra.gmra.mxu1 %vm384_vm3, %v2619_v16  ;;  %2288 = vmatprep.subr.mxu1 %v2492_v25 }
 0x408   : > { %2277 = vmatprep.mubr.msk.f32.mxu1 %vm384_vm3, %v2624_v17 }
 0x40b   : > { %2278 = vmatmul.mubr.msk.f32.gmra.mxu1 %vm384_vm3, %v2633_v18 }
 0x40c   : > { %2296 = vmatprep.mubr.msk.f32.mxu1 %vm2493_vm4, %v2492_v25 }
 0x4c7   : > { %v2276_v58 = vpop.f32.mrf.mxu1 }
 0x4c9   : > { %v913_v59 = vpop.f32.mrf.mxu1 }
 0x4ca   : > { %2282 = vmatprep.mubr.msk.f32.mxu0 %vm297_vm2, %v913_v59 }
 0x4cb   : > { %v2279_v60 = vpop.f32.mrf.mxu1  ;;  %2283 = vmatmul.mubr.msk.f32.vlgmr.msra.gmra.mxu0 %vm297_vm2, %v2276_v58 }
 0x4cc   : > { %2300 = vmatpush3.msk.msra.mxu0 %vm210_vm1, %v2090_v57 }
 0x4cd   : > { %v923_v61 = vpop.f32.mrf.mxu1 }
 0x4ce   : > { %2285 = vmatprep.mubr.msk.f32.mxu0 %vm297_vm2, %v923_v61 }
 0x4cf   : > { %2286 = vmatmul.mubr.msk.f32.gmra.mxu0 %vm297_vm2, %v2279_v60 }
 0x4d0   : > { %2301 = vmatprep.mubr.msk.f32.mxu0 %vm203_vm0, %v2570_v0 }
 0x4d3   : > { %2302 = vmatmul.mubr.msk.f32.vlgmr.msra.gmra.mxu0 %vm203_vm0, %v2583_v2 }
 0x4d4   : > { %2313 = vmatprep.mubr.msk.f32.mxu0 %vm384_vm3, %v2606_v7 }
 0x58b   : > { %v2284_v62 = vpop.f32.mrf.mxu0 }
 0x58c   : > { %v1016_v5 = vadd.f32 %v2284_v62, %v2667_v32 }
 0x58d   : > { %v1010_v63 = vpop.f32.mrf.mxu0 }
 0x58e   : > { %v1011_v10 = vadd.f32 %v1010_v63, %v2670_v35  ;;  %v1030_v14 = vmax.f32 %v1016_v5, 0.0 }
 0x58f   : > { %v2287_v1 = vpop.f32.mrf.mxu0 }
 0x590   : > { %v1026_v3 = vadd.f32 %v2287_v1, %v2663_v28  ;;  %v1029_v15 = vmax.f32 %v1011_v10, 0.0 }
 0x591   : > { %v1020_v4 = vpop.f32.mrf.mxu0 }
 0x592   : > { %v1032_v6 = vmax.f32 %v1026_v3, 0.0  ;;  %v1021_v9 = vadd.f32 %v1020_v4, %v2665_v29 }
 0x593   : > { %v2303_v13 = vpop.f32.mrf.mxu0 }
 0x594   : > { %v1031_v12 = vmax.f32 %v1021_v9, 0.0  ;;  %2289 = vmatpush3.msra.mxu1 %v1032_v6 }
 0x595   : > { %2290 = vmatprep.subr.mxu1 %v2492_v25  ;;  %v1178_v20 = vpop.f32.mrf.mxu0 }
 0x596   : > { %2291 = vmatpush3.msra.mxu1 %v1031_v12 }
 0x597   : > { %2292 = vmatprep.subr.mxu1 %v2492_v25 }
 0x598   : > { %2293 = vmatpush3.msra.mxu1 %v1030_v14 }
 0x599   : > { %2294 = vmatprep.subr.mxu1 %v2492_v25 }
 0x59a   : > { %2295 = vmatpush3.msra.mxu1 %v1029_v15 }
 0x59b   : > { %2297 = vmatmul.mubr.msk.f32.vlgmr.msra.gmra.mxu1 %vm604_vm5, %v2660_v26  ;;  %2304 = vmatprep.subr.msk.mxu1 %vm297_vm2, %v2089_v19 }
 0x59c   : > { %2305 = vmatpush3.xpose.msk.msra.mxu1 %vm297_vm2, %v2089_v19  ;;  %2306 = vmatprep.mubr.msk.f32.mxu1 %vm297_vm2, %v1178_v20 }
 0x59d   : > { %2319 = vmatprep.subr.msk.mxu1 %vm297_vm2, %v2089_v19 }
 0x59f   : > { %2307 = vmatmul.mubr.msk.f32.vlgmr.msra.gmra.mxu1 %vm297_vm2, %v2303_v13 }
 0x5a0   : > { %2320 = vmatpush3.xpose.msk.msra.mxu1 %vm297_vm2, %v2089_v19 }
 0x5a1   : > { %2338 = vmatprep.subr.msk.mxu1 %vm210_vm1, %v2109_v36 }
 0x65b   : > { %v1099_v21 = vpop.f32.mrf.mxu1 }
 0x65c   : > { %v1100_v22 = vadd.f32 %v1099_v21, %v2690_v47 }
 0x65d   : > { %v2298_v23 = vpop.f32.mrf.mxu1 }
 0x65e   : > { %2088 = vst.msk [vmem:[%s2693_s5 + $0x1] sm:$0x1] %vm677_vm6, %v1100_v22 }
 0x65f   : > { %v2308_v24 = vpop.f32.mrf.mxu1 }
 0x660   : > { %v1268_v27 = vadd.f32 %v2308_v24, %v2610_v8 }
 0x661   : > { %v1262_v30 = vpop.f32.mrf.mxu1 }
 0x662   : > { %v1272_v31 = vmax.f32 %v1268_v27, 0.0  ;;  %v1263_v33 = vadd.f32 %v1262_v30, %v2613_v11 }
 0x664   : > { %v1271_v34 = vmax.f32 %v1263_v33, 0.0  ;;  %2309 = vmatprep.subr.mxu0 %v1272_v31 }
 0x665   : > { %2310 = vmatpush3.msra.mxu0 %v1272_v31 }
 0x666   : > { %2311 = vmatprep.subr.mxu0 %v1271_v34 }
 0x667   : > { %2312 = vmatpush3.msra.mxu0 %v1271_v34 }
 0x668   : > { %2314 = vmatmul.mubr.msk.f32.vlgmr.msra.gmra.mxu0 %vm384_vm3, %v2619_v16  ;;  %2327 = vmatprep.subr.mxu0 %v2492_v25 }
 0x669   : > { %2316 = vmatprep.mubr.msk.f32.mxu0 %vm384_vm3, %v2624_v17 }
 0x66c   : > { %2317 = vmatmul.mubr.msk.f32.gmra.mxu0 %vm384_vm3, %v2633_v18 }
 0x66d   : > { %2335 = vmatprep.mubr.msk.f32.mxu0 %vm2493_vm4, %v2492_v25 }
 0x728   : > { %v2315_v37 = vpop.f32.mrf.mxu0 }
 0x72a   : > { %v1339_v38 = vpop.f32.mrf.mxu0 }
 0x72b   : > { %2321 = vmatprep.mubr.msk.f32.mxu1 %vm297_vm2, %v1339_v38 }
 0x72c   : > { %v2318_v39 = vpop.f32.mrf.mxu0  ;;  %2322 = vmatmul.mubr.msk.f32.vlgmr.msra.gmra.mxu1 %vm297_vm2, %v2315_v37 }
 0x72d   : > { %2339 = vmatpush3.msk.msra.mxu1 %vm210_vm1, %v2109_v36 }
 0x72e   : > { %v1349_v40 = vpop.f32.mrf.mxu0 }
 0x72f   : > { %2324 = vmatprep.mubr.msk.f32.mxu1 %vm297_vm2, %v1349_v40 }
 0x730   : > { %2325 = vmatmul.mubr.msk.f32.gmra.mxu1 %vm297_vm2, %v2318_v39 }
 0x731   : > { %2340 = vmatprep.mubr.msk.f32.mxu1 %vm203_vm0, %v2570_v0 }
 0x734   : > { %2341 = vmatmul.mubr.msk.f32.vlgmr.msra.gmra.mxu1 %vm203_vm0, %v2583_v2 }
 0x735   : > { %2352 = vmatprep.mubr.msk.f32.mxu1 %vm384_vm3, %v2606_v7 }
 0x7ec   : > { %v2323_v41 = vpop.f32.mrf.mxu1 }
 0x7ed   : > { %v1442_v46 = vadd.f32 %v2323_v41, %v2667_v32 }
 0x7ee   : > { %v1436_v42 = vpop.f32.mrf.mxu1 }
 0x7ef   : > { %v1437_v0 = vadd.f32 %v1436_v42, %v2670_v35  ;;  %v1456_v7 = vmax.f32 %v1442_v46, 0.0 }
 0x7f0   : > { %v2326_v43 = vpop.f32.mrf.mxu1 }
 0x7f1   : > { %v1452_v44 = vadd.f32 %v2326_v43, %v2663_v28  ;;  %v1455_v51 = vmax.f32 %v1437_v0, 0.0 }
 0x7f2   : > { %v1446_v45 = vpop.f32.mrf.mxu1 }
 0x7f3   : > { %v1458_v48 = vmax.f32 %v1452_v44, 0.0  ;;  %v1447_v49 = vadd.f32 %v1446_v45, %v2665_v29 }
 0x7f4   : > { %v2342_v2 = vpop.f32.mrf.mxu1 }
 0x7f5   : > { %v1457_v50 = vmax.f32 %v1447_v49, 0.0  ;;  %2328 = vmatpush3.msra.mxu0 %v1458_v48 }
 0x7f6   : > { %2329 = vmatprep.subr.mxu0 %v2492_v25  ;;  %v1604_v53 = vpop.f32.mrf.mxu1 }
 0x7f7   : > { %2330 = vmatpush3.msra.mxu0 %v1457_v50 }
 0x7f8   : > { %2331 = vmatprep.subr.mxu0 %v2492_v25 }
 0x7f9   : > { %2332 = vmatpush3.msra.mxu0 %v1456_v7 }
 0x7fa   : > { %2333 = vmatprep.subr.mxu0 %v2492_v25 }
 0x7fb   : > { %2334 = vmatpush3.msra.mxu0 %v1455_v51 }
 0x7fc   : > { %2336 = vmatmul.mubr.msk.f32.vlgmr.msra.gmra.mxu0 %vm604_vm5, %v2660_v26  ;;  %2343 = vmatprep.subr.msk.mxu0 %vm297_vm2, %v2108_v52 }
 0x7fd   : > { %2344 = vmatpush3.xpose.msk.msra.mxu0 %vm297_vm2, %v2108_v52  ;;  %2345 = vmatprep.mubr.msk.f32.mxu0 %vm297_vm2, %v1604_v53 }
 0x7fe   : > { %2358 = vmatprep.subr.msk.mxu0 %vm297_vm2, %v2108_v52 }
 0x800   : > { %2346 = vmatmul.mubr.msk.f32.vlgmr.msra.gmra.mxu0 %vm297_vm2, %v2342_v2 }
 0x801   : > { %2359 = vmatpush3.xpose.msk.msra.mxu0 %vm297_vm2, %v2108_v52 }
 0x8bc   : > { %v1525_v54 = vpop.f32.mrf.mxu0 }
 0x8bd   : > { %v1526_v55 = vadd.f32 %v1525_v54, %v2690_v47 }
 0x8be   : > { %v2337_v56 = vpop.f32.mrf.mxu0 }
 0x8bf   : > { %2107 = vst.msk [vmem:[%s2693_s5 + $0x2] sm:$0x1] %vm677_vm6, %v1526_v55 }
 0x8c0   : > { %v2347_v57 = vpop.f32.mrf.mxu0 }
 0x8c1   : > { %v1694_v58 = vadd.f32 %v2347_v57, %v2610_v8 }
 0x8c2   : > { %v1688_v59 = vpop.f32.mrf.mxu0 }
 0x8c3   : > { %v1698_v60 = vmax.f32 %v1694_v58, 0.0  ;;  %v1689_v61 = vadd.f32 %v1688_v59, %v2613_v11 }
 0x8c5   : > { %v1697_v62 = vmax.f32 %v1689_v61, 0.0  ;;  %2348 = vmatprep.subr.mxu1 %v1698_v60 }
 0x8c6   : > { %2349 = vmatpush3.msra.mxu1 %v1698_v60 }
 0x8c7   : > { %2350 = vmatprep.subr.mxu1 %v1697_v62 }
 0x8c8   : > { %2351 = vmatpush3.msra.mxu1 %v1697_v62 }
 0x8c9   : > { %2353 = vmatmul.mubr.msk.f32.vlgmr.msra.gmra.mxu1 %vm384_vm3, %v2619_v16  ;;  %2366 = vmatprep.subr.mxu1 %v2492_v25 }
 0x8ca   : > { %2355 = vmatprep.mubr.msk.f32.mxu1 %vm384_vm3, %v2624_v17 }
 0x8cd   : > { %2356 = vmatmul.mubr.msk.f32.gmra.mxu1 %vm384_vm3, %v2633_v18 }
 0x8ce   : > { %2374 = vmatprep.mubr.msk.f32.mxu1 %vm2493_vm4, %v2492_v25 }
 0x989   : > { %v2354_v8 = vpop.f32.mrf.mxu1 }
 0x98b   : > { %v1765_v11 = vpop.f32.mrf.mxu1 }
 0x98c   : > { %2360 = vmatprep.mubr.msk.f32.mxu0 %vm297_vm2, %v1765_v11 }
 0x98d   : > { %v2357_v63 = vpop.f32.mrf.mxu1  ;;  %2361 = vmatmul.mubr.msk.f32.vlgmr.msra.gmra.mxu0 %vm297_vm2, %v2354_v8 }
 0x98f   : > { %v1775_v1 = vpop.f32.mrf.mxu1 }
 0x990   : > { %2363 = vmatprep.mubr.msk.f32.mxu0 %vm297_vm2, %v1775_v1 }
 0x991   : > { %2364 = vmatmul.mubr.msk.f32.gmra.mxu0 %vm297_vm2, %v2357_v63 }
 0xa4d   : > { %v2362_v16 = vpop.f32.mrf.mxu0 }
 0xa4e   : > { %v1868_v5 = vadd.f32 %v2362_v16, %v2667_v32 }
 0xa4f   : > { %v1862_v17 = vpop.f32.mrf.mxu0 }
 0xa50   : > { %v1863_v10 = vadd.f32 %v1862_v17, %v2670_v35  ;;  %v1882_v13 = vmax.f32 %v1868_v5, 0.0 }
 0xa51   : > { %v2365_v3 = vpop.f32.mrf.mxu0 }
 0xa52   : > { %v1878_v18 = vadd.f32 %v2365_v3, %v2663_v28  ;;  %v1881_v28 = vmax.f32 %v1863_v10, 0.0 }
 0xa53   : > { %v1872_v4 = vpop.f32.mrf.mxu0 }
 0xa54   : > { %v1884_v6 = vmax.f32 %v1878_v18, 0.0  ;;  %v1873_v9 = vadd.f32 %v1872_v4, %v2665_v29 }
 0xa56   : > { %v1883_v12 = vmax.f32 %v1873_v9, 0.0  ;;  %2367 = vmatpush3.msra.mxu1 %v1884_v6 }
 0xa57   : > { %2368 = vmatprep.subr.mxu1 %v2492_v25 }
 0xa58   : > { %2369 = vmatpush3.msra.mxu1 %v1883_v12 }
 0xa59   : > { %2370 = vmatprep.subr.mxu1 %v2492_v25 }
 0xa5a   : > { %2371 = vmatpush3.msra.mxu1 %v1882_v13 }
 0xa5b   : > { %2372 = vmatprep.subr.mxu1 %v2492_v25 }
 0xa5c   : > { %2373 = vmatpush3.msra.mxu1 %v1881_v28 }
 0xa5d   : > { %2375 = vmatmul.mubr.msk.f32.vlgmr.msra.gmra.mxu1 %vm604_vm5, %v2660_v26 }
 0xb1d   : > { %v1951_v29 = vpop.f32.mrf.mxu1 }
 0xb1e   : > { %v1952_v32 = vadd.f32 %v1951_v29, %v2690_v47 }
 0xb1f   : > { %v2376_v25 = vpop.f32.mrf.mxu1 }
 0xb20   : > { %2126 = vst.msk [vmem:[%s2693_s5 + $0x3] sm:$0x1] %vm677_vm6, %v1952_v32 }
 0xb21   : > { %2441 = shalt.err (!%p2438_p3)
}
 0xb22   : > { %s2442_s20 = scalar_lea.hbm %s2814_s9, 64  ;;  %s2446_s26 = scalar_lea.hbm %s2864_s3, 128 }
 0xb23   : > { %p2443_p4 = scmp.ne.s32.totalorder %s2814_s9, %s2442_s20  ;;  %p2447_p9 = scmp.lt.s32.totalorder %s2814_s9, %s2864_s3 }
 0xb24   : > { %p2448_p10 = scmp.lt.s32.totalorder %s2446_s26, %s2442_s20 }
 0xb25   : > { %p2444_p7 = pnand %p2443_p4, %p2556_p5 }
 0xb26   : > { %p2449_p11 = por %p2448_p10, %p2447_p9 }
 0xb27   : > { %p2445_p8 = pneg %p2444_p7 }
 0xb29   : > { %p2450_p12 = pnand %p2449_p11, %p2445_p8 }
 0xb2b   : > { %2453 = shalt.err (!%p2450_p12)
}
 0xb2c   : > { %s2496_s29 = smov 16   ;;  %s2497_s4 = smov 1  }
 0xb2d   : > { %2377 = dma.vmem_to_hbm [thread:$0]  (%p2556_p5), %s2809_s30, 64, %s2814_s9, %s2821_s10, %s2496_s29, %s2496_s29, %s2497_s4  }
 0xb2e PF: > { %p2383_p13 = scmp.ge.s32.totalorder %s2488_s15, 2  ;;  %s1986_s5 = sand.u32 1, %s2476_s12  }
 0xb2f   : > { %s1987_s6 = scalar_lea.sflag [#allocation3], %s1986_s5 }
 0xb30   : > { %p2380_p0 = pnand %p2383_p13, %p2560_p6 }
 0xb32   : > { %p2381_p1 = pneg %p2380_p0 }
 0xb34   : > { %2471 = dma.done.wait (%p2381_p1), %s1987_s6, 64  }
 0xb35   : > { %2473 = vsyncadd (%p2381_p1), %s1987_s6, 4294967232  ;;  %p13_p2 = scmp.ge.s32.totalorder %s2543_s18, 4   ;;  %s2867_s12 = smov %s2480_s13 }
 0xb36   : > { %s2868_s13 = smov %s2484_s14  ;;  %s2869_s14 = smov %s2554_s21 }
 0xb37   : > { %s2870_s15 = smov %s2543_s18  ;;  %15 = sbr.rel (!%p13_p2) target bundleno = 3 (0x3), region = 79 }
 0xb3c   :  { %1992 = vsyncpa [#allocation3], 1 }
 0xb3d   :  { %1994 = vsyncpa [#allocation3 + $0x1], 1 }

</bundles_post_ra>
